<compile_context>
chip_gen: v7x
topology: tpu7x:2x2x1
jax: 0.10.0
libtpu: 0.0.40
codegen_flags: <defaults>
</compile_context>

<pallas_src>
import functools

import jax
import jax.numpy as jnp
from jax.experimental import pallas as pl
from jax.experimental.pallas import tpu as pltpu


# ----------------------------- Pallas kernel -------------------------------

def _conv3x3_relu_kernel(x_ref, w_ref, o_ref, *, N, H, W, Cin, Cout):
    """Whole problem in one invocation (no grid).

    x_ref: (N, Cin, H*W)        NCHW input, spatial flattened on the lane axis
    w_ref: (Cout, 9*Cin + 1)    packed per-tap weights + trailing bias column
    o_ref: (N, Cout, H*W)       NCHW output, spatial flattened on the lane axis
    """
    HW = H * W
    NHW = N * HW

    # Stack the batch along the lane axis inside VMEM (no HBM-side transpose).
    # N*HW stays a multiple of 128 -> clean vreg placement.
    if N == 1:
        x = x_ref[0]                                        # (Cin, HW)
    else:
        x = jnp.concatenate([x_ref[n] for n in range(N)], axis=1)   # (Cin, NHW)

    # Loop-invariant border masks, computed once.  Use shift/mask when H and W
    # are powers of two (avoids the multi-op integer-divide sequence).
    p = jax.lax.broadcasted_iota(jnp.int32, (1, NHW), 1)
    if (W & (W - 1)) == 0 and (H & (H - 1)) == 0:
        w_idx = p & (W - 1)
        h_idx = (p >> (W.bit_length() - 1)) & (H - 1)
    else:
        w_idx = p % W
        h_idx = (p // W) % H
    mask_top = h_idx >= 1          # needed when dh == -1
    mask_bot = h_idx < H - 1       # needed when dh == +1
    mask_left = w_idx >= 1         # needed when dw == -1
    mask_right = w_idx < W - 1     # needed when dw == +1

    # Build the (9*Cin + 1, N*HW) input stack: one shifted + border-masked
    # plane per 3x3 tap (XLU roll + VPU where), plus a ones row that carries
    # the folded bias.  Circular wrap (within and across images) always lands
    # on positions zeroed by the h/w border masks, so SAME padding is exact.
    planes = []
    for dh in (-1, 0, 1):
        for dw in (-1, 0, 1):
            s = dh * W + dw                                 # flattened shift
            sh = x if s == 0 else pltpu.roll(x, shift=(-s) % NHW, axis=1)
            conds = []
            if dh < 0:
                conds.append(mask_top)
            if dh > 0:
                conds.append(mask_bot)
            if dw < 0:
                conds.append(mask_left)
            if dw > 0:
                conds.append(mask_right)
            if conds:
                m = conds[0]
                for c in conds[1:]:
                    m = jnp.logical_and(m, c)
                sh = jnp.where(m, sh, 0.0)                  # zero (SAME) pad
            planes.append(sh)                               # (Cin, NHW)
    planes.append(jnp.ones((1, NHW), dtype=jnp.float32))    # bias row
    stack = jnp.concatenate(planes, axis=0)                 # (9*Cin+1, NHW)

    # One fused MXU matmul covering all taps, channels, batches (+ bias).
    acc = jnp.dot(w_ref[...], stack,
                  preferred_element_type=jnp.float32)       # (Cout, NHW)
    y = jnp.maximum(acc, 0.0)                               # ReLU

    # Lane-dense stores (HW = 256 lanes, multiple of 128 -> unmasked vst).
    for n in range(N):
        o_ref[n] = y[:, n * HW:(n + 1) * HW].astype(o_ref.dtype)


@jax.jit
def conv3x3_relu_pallas(x_nchw, w_packed):
    """Synthetic 'engine' execution: NCHW in -> NCHW out (f32)."""
    N, Cin, H, W = x_nchw.shape
    Cout = w_packed.shape[0]
    HW = H * W

    # Free, contiguous reshape (no data movement): NCHW -> (N, Cin, H*W).
    x_flat = x_nchw.astype(jnp.float32).reshape(N, Cin, HW)

    kernel = functools.partial(_conv3x3_relu_kernel,
                               N=N, H=H, W=W, Cin=Cin, Cout=Cout)

    # Whole (tiny) problem in VMEM, no grid.  If the engine ever scales, add a
    # batch / spatial-tile grid axis marked "parallel" (v7x has 2 TensorCores)
    # and re-derive tile sizes against v7x's 64 MiB VMEM.
    out_flat = pl.pallas_call(
        kernel,
        out_shape=jax.ShapeDtypeStruct((N, Cout, HW), jnp.float32),
        in_specs=[
            pl.BlockSpec(memory_space=pltpu.MemorySpace.VMEM),
            pl.BlockSpec(memory_space=pltpu.MemorySpace.VMEM),
        ],
        out_specs=pl.BlockSpec(memory_space=pltpu.MemorySpace.VMEM),
    )(x_flat, w_packed)

    # Free, contiguous reshape back to NCHW.
    return out_flat.reshape(N, Cout, H, W)


# ----------------------------- Wrapper class --------------------------------

class TRTWraperPallas:
    """Pallas equivalent of TRTWraper: name-keyed dict in, name-keyed dict out.

    The wrapped 'engine' is the synthetic conv3x3+bias+ReLU above.
    """

    def __init__(self, weight, bias, input_names, output_names):
        assert input_names is not None and output_names is not None
        self.input_names = list(input_names)
        self.output_names = list(output_names)
        # weight: (3, 3, Cin, Cout) HWIO; bias: (1, Cout).
        Cin, Cout = weight.shape[2], weight.shape[3]
        # One-time packing into the fused-matmul layout:
        #   column index (kh*3 + kw)*Cin + cin  ->  weight[kh, kw, cin, cout]
        # plus a trailing bias column (bias folded into the matmul).
        w_p = jnp.transpose(weight.astype(jnp.float32),
                            (3, 0, 1, 2)).reshape(Cout, 9 * Cin)
        b_col = jnp.reshape(bias.astype(jnp.float32), (Cout, 1))
        self.w_packed = jnp.concatenate([w_p, b_col], axis=1)   # (Cout, 9*Cin+1)
        # TODO(synk): engine (de)serialization / execution-context / state_dict
        # hooks have no Pallas equivalent; parameters are held directly instead.

    def forward(self, inputs):
        assert self.input_names is not None
        assert self.output_names is not None
        bound = {}
        for name, tensor in inputs.items():
            assert name in self.input_names, f"unknown binding {name}"
            # TRT has no int64 binding: mirror the torch.long -> int32 cast.
            if tensor.dtype == jnp.int64:
                tensor = tensor.astype(jnp.int32)
            bound[name] = tensor

        x = bound[self.input_names[0]]
        y = conv3x3_relu_pallas(x, self.w_packed)

        outputs = {}
        for output_name in self.output_names:
            outputs[output_name] = y
        return outputs

    __call__ = forward


# --------------------------------- main --------------------------------------

if __name__ == "__main__":
    key = jax.random.PRNGKey(0)
    k_x, k_w, k_b = jax.random.split(key, 3)

    N, Cin, H, W, Cout = 2, 4, 16, 16, 8

    x = jax.random.normal(k_x, (N, Cin, H, W), dtype=jnp.float32)         # NCHW
    weight = jax.random.normal(k_w, (3, 3, Cin, Cout), dtype=jnp.float32) * 0.1
    bias = jax.random.normal(k_b, (1, Cout), dtype=jnp.float32) * 0.1

    wrapper = TRTWraperPallas(weight, bias,
                              input_names=["input"],
                              output_names=["output"])

    outputs = wrapper({"input": x})
    out = jax.block_until_ready(outputs["output"])

    # Reference check against plain-JAX conv (NCHW, SAME, 3x3) + bias + ReLU.
    w_oihw = jnp.transpose(weight, (3, 2, 0, 1))  # (Cout, Cin, 3, 3)
    ref = jax.lax.conv_general_dilated(
        x, w_oihw, window_strides=(1, 1), padding="SAME",
        dimension_numbers=("NCHW", "OIHW", "NCHW"))
    ref = jnp.maximum(ref + bias[0].reshape(1, Cout, 1, 1), 0.0)

    assert out.shape == (N, Cout, H, W), out.shape
    assert jnp.allclose(out, ref, atol=1e-4, rtol=1e-4), "mismatch vs reference"

    print("KERNEL_OK")
</pallas_src>

<mosaic_0001>
module attributes {stable_mosaic.version = 11 : i64} {
  func.func @_conv3x3_relu_kernel(%arg0: memref<2x4x256xf32, #tpu.memory_space<vmem>>, %arg1: memref<8x37xf32, #tpu.memory_space<vmem>>, %arg2: memref<2x8x256xf32, #tpu.memory_space<vmem>>) attributes {dimension_semantics = [], scalar_prefetch = 0 : i64, scratch_operands = 0 : i64, tpu.core_type = #tpu.core_type<tc>} {
    %c0 = arith.constant 0 : index
    %c0_0 = arith.constant 0 : index
    %c0_1 = arith.constant 0 : index
    %0 = vector.load %arg0[%c0, %c0_0, %c0_1] : memref<2x4x256xf32, #tpu.memory_space<vmem>>, vector<1x4x256xf32>
    %1 = vector.shape_cast %0 : vector<1x4x256xf32> to vector<4x256xf32>
    %c1 = arith.constant 1 : index
    %c0_2 = arith.constant 0 : index
    %c0_3 = arith.constant 0 : index
    %2 = vector.load %arg0[%c1, %c0_2, %c0_3] : memref<2x4x256xf32, #tpu.memory_space<vmem>>, vector<1x4x256xf32>
    %3 = vector.shape_cast %2 : vector<1x4x256xf32> to vector<4x256xf32>
    %4 = tpu.concatenate %1, %3 in 1 : vector<4x256xf32>, vector<4x256xf32> -> vector<4x512xf32>
    %5 = tpu.iota {dimensions = array<i32: 1>} : vector<1x512xi32>
    %c15_i32 = arith.constant 15 : i32
    %6 = vector.broadcast %c15_i32 : i32 to vector<1x512xi32>
    %7 = arith.andi %5, %6 : vector<1x512xi32>
    %c4_i32 = arith.constant 4 : i32
    %8 = vector.broadcast %c4_i32 : i32 to vector<1x512xi32>
    %9 = arith.shrsi %5, %8 : vector<1x512xi32>
    %c15_i32_4 = arith.constant 15 : i32
    %10 = vector.broadcast %c15_i32_4 : i32 to vector<1x512xi32>
    %11 = arith.andi %9, %10 : vector<1x512xi32>
    %c1_i32 = arith.constant 1 : i32
    %12 = vector.broadcast %c1_i32 : i32 to vector<1x512xi32>
    %13 = arith.cmpi sge, %11, %12 : vector<1x512xi32>
    %c15_i32_5 = arith.constant 15 : i32
    %14 = vector.broadcast %c15_i32_5 : i32 to vector<1x512xi32>
    %15 = arith.cmpi slt, %11, %14 : vector<1x512xi32>
    %c1_i32_6 = arith.constant 1 : i32
    %16 = vector.broadcast %c1_i32_6 : i32 to vector<1x512xi32>
    %17 = arith.cmpi sge, %7, %16 : vector<1x512xi32>
    %c15_i32_7 = arith.constant 15 : i32
    %18 = vector.broadcast %c15_i32_7 : i32 to vector<1x512xi32>
    %19 = arith.cmpi slt, %7, %18 : vector<1x512xi32>
    %c17_i32 = arith.constant 17 : i32
    %20 = tpu.dynamic_rotate %4 by %c17_i32 dim 1 : vector<4x512xf32>, i32 -> vector<4x512xf32>
    %21 = arith.andi %13, %17 : vector<1x512xi1>
    %cst = arith.constant 0.000000e+00 : f32
    %22 = vector.shape_cast %21 : vector<1x512xi1> to vector<1x512xi1>
    %23 = vector.broadcast %22 : vector<1x512xi1> to vector<4x512xi1>
    %24 = vector.broadcast %cst : f32 to vector<4x512xf32>
    %25 = arith.select %23, %20, %24 : vector<4x512xi1>, vector<4x512xf32>
    %c16_i32 = arith.constant 16 : i32
    %26 = tpu.dynamic_rotate %4 by %c16_i32 dim 1 : vector<4x512xf32>, i32 -> vector<4x512xf32>
    %cst_8 = arith.constant 0.000000e+00 : f32
    %27 = vector.shape_cast %13 : vector<1x512xi1> to vector<1x512xi1>
    %28 = vector.broadcast %27 : vector<1x512xi1> to vector<4x512xi1>
    %29 = vector.broadcast %cst_8 : f32 to vector<4x512xf32>
    %30 = arith.select %28, %26, %29 : vector<4x512xi1>, vector<4x512xf32>
    %c15_i32_9 = arith.constant 15 : i32
    %31 = tpu.dynamic_rotate %4 by %c15_i32_9 dim 1 : vector<4x512xf32>, i32 -> vector<4x512xf32>
    %32 = arith.andi %13, %19 : vector<1x512xi1>
    %cst_10 = arith.constant 0.000000e+00 : f32
    %33 = vector.shape_cast %32 : vector<1x512xi1> to vector<1x512xi1>
    %34 = vector.broadcast %33 : vector<1x512xi1> to vector<4x512xi1>
    %35 = vector.broadcast %cst_10 : f32 to vector<4x512xf32>
    %36 = arith.select %34, %31, %35 : vector<4x512xi1>, vector<4x512xf32>
    %c1_i32_11 = arith.constant 1 : i32
    %37 = tpu.dynamic_rotate %4 by %c1_i32_11 dim 1 : vector<4x512xf32>, i32 -> vector<4x512xf32>
    %cst_12 = arith.constant 0.000000e+00 : f32
    %38 = vector.shape_cast %17 : vector<1x512xi1> to vector<1x512xi1>
    %39 = vector.broadcast %38 : vector<1x512xi1> to vector<4x512xi1>
    %40 = vector.broadcast %cst_12 : f32 to vector<4x512xf32>
    %41 = arith.select %39, %37, %40 : vector<4x512xi1>, vector<4x512xf32>
    %c511_i32 = arith.constant 511 : i32
    %42 = tpu.dynamic_rotate %4 by %c511_i32 dim 1 : vector<4x512xf32>, i32 -> vector<4x512xf32>
    %cst_13 = arith.constant 0.000000e+00 : f32
    %43 = vector.shape_cast %19 : vector<1x512xi1> to vector<1x512xi1>
    %44 = vector.broadcast %43 : vector<1x512xi1> to vector<4x512xi1>
    %45 = vector.broadcast %cst_13 : f32 to vector<4x512xf32>
    %46 = arith.select %44, %42, %45 : vector<4x512xi1>, vector<4x512xf32>
    %c497_i32 = arith.constant 497 : i32
    %47 = tpu.dynamic_rotate %4 by %c497_i32 dim 1 : vector<4x512xf32>, i32 -> vector<4x512xf32>
    %48 = arith.andi %15, %17 : vector<1x512xi1>
    %cst_14 = arith.constant 0.000000e+00 : f32
    %49 = vector.shape_cast %48 : vector<1x512xi1> to vector<1x512xi1>
    %50 = vector.broadcast %49 : vector<1x512xi1> to vector<4x512xi1>
    %51 = vector.broadcast %cst_14 : f32 to vector<4x512xf32>
    %52 = arith.select %50, %47, %51 : vector<4x512xi1>, vector<4x512xf32>
    %c496_i32 = arith.constant 496 : i32
    %53 = tpu.dynamic_rotate %4 by %c496_i32 dim 1 : vector<4x512xf32>, i32 -> vector<4x512xf32>
    %cst_15 = arith.constant 0.000000e+00 : f32
    %54 = vector.shape_cast %15 : vector<1x512xi1> to vector<1x512xi1>
    %55 = vector.broadcast %54 : vector<1x512xi1> to vector<4x512xi1>
    %56 = vector.broadcast %cst_15 : f32 to vector<4x512xf32>
    %57 = arith.select %55, %53, %56 : vector<4x512xi1>, vector<4x512xf32>
    %c495_i32 = arith.constant 495 : i32
    %58 = tpu.dynamic_rotate %4 by %c495_i32 dim 1 : vector<4x512xf32>, i32 -> vector<4x512xf32>
    %59 = arith.andi %15, %19 : vector<1x512xi1>
    %cst_16 = arith.constant 0.000000e+00 : f32
    %60 = vector.shape_cast %59 : vector<1x512xi1> to vector<1x512xi1>
    %61 = vector.broadcast %60 : vector<1x512xi1> to vector<4x512xi1>
    %62 = vector.broadcast %cst_16 : f32 to vector<4x512xf32>
    %63 = arith.select %61, %58, %62 : vector<4x512xi1>, vector<4x512xf32>
    %cst_17 = arith.constant 1.000000e+00 : f32
    %64 = vector.broadcast %cst_17 : f32 to vector<1x512xf32>
    %65 = tpu.concatenate %25, %30, %36, %41, %4, %46, %52, %57, %63, %64 in 0 : vector<4x512xf32>, vector<4x512xf32>, vector<4x512xf32>, vector<4x512xf32>, vector<4x512xf32>, vector<4x512xf32>, vector<4x512xf32>, vector<4x512xf32>, vector<4x512xf32>, vector<1x512xf32> -> vector<37x512xf32>
    %c0_18 = arith.constant 0 : index
    %c0_19 = arith.constant 0 : index
    %66 = vector.load %arg1[%c0_18, %c0_19] : memref<8x37xf32, #tpu.memory_space<vmem>>, vector<8x37xf32>
    %cst_20 = arith.constant dense<0.000000e+00> : vector<8x512xf32>
    %67 = tpu.matmul %66, %65, %cst_20 {dimension_numbers = #tpu.dot_dimension_numbers<[1], [0], [0], [1], [0, 0, 1, 1], [], []>} : vector<8x37xf32>, vector<37x512xf32>, vector<8x512xf32> -> vector<8x512xf32>
    %cst_21 = arith.constant 0.000000e+00 : f32
    %68 = vector.broadcast %cst_21 : f32 to vector<8x512xf32>
    %69 = arith.maximumf %67, %68 : vector<8x512xf32>
    %70 = vector.extract_strided_slice %69 {offsets = [0, 0], sizes = [8, 256], strides = [1, 1]} : vector<8x512xf32> to vector<8x256xf32>
    %c0_22 = arith.constant 0 : index
    %c0_23 = arith.constant 0 : index
    %c0_24 = arith.constant 0 : index
    %71 = vector.load %arg2[%c0_22, %c0_23, %c0_24] : memref<2x8x256xf32, #tpu.memory_space<vmem>>, vector<1x8x256xf32>
    %72 = vector.shape_cast %71 : vector<1x8x256xf32> to vector<8x256xf32>
    %73 = vector.shape_cast %70 : vector<8x256xf32> to vector<1x8x256xf32>
    tpu.vector_store %arg2[%c0_22, %c0_23, %c0_24], %73 {strides = array<i32>} : memref<2x8x256xf32, #tpu.memory_space<vmem>>, vector<1x8x256xf32>,
    %74 = vector.extract_strided_slice %69 {offsets = [0, 256], sizes = [8, 256], strides = [1, 1]} : vector<8x512xf32> to vector<8x256xf32>
    %c1_25 = arith.constant 1 : index
    %c0_26 = arith.constant 0 : index
    %c0_27 = arith.constant 0 : index
    %75 = vector.load %arg2[%c1_25, %c0_26, %c0_27] : memref<2x8x256xf32, #tpu.memory_space<vmem>>, vector<1x8x256xf32>
    %76 = vector.shape_cast %75 : vector<1x8x256xf32> to vector<8x256xf32>
    %77 = vector.shape_cast %74 : vector<8x256xf32> to vector<1x8x256xf32>
    tpu.vector_store %arg2[%c1_25, %c0_26, %c0_27], %77 {strides = array<i32>} : memref<2x8x256xf32, #tpu.memory_space<vmem>>, vector<1x8x256xf32>,
    return
  }
}

</mosaic_0001>

<bundles_post_ra>
// kernel: conv3x3_relu_pallas.1
= control target key start
LH: loop header
LB: loop body
LE: loop exit
PB: predicated region body
PF: predicated region fallthrough
CT: control target
= control target key end

     0   :  { %s617_s13 = smov 1   ;;  %s618_s14 = smov 16   ;;  %v625_v6 = vmov 0.0   ;;  %v20_v7 = vlaneseq  ;;  %v1049_v23 = vmov 0  ;;  %v1053_v31 = vmov 0  ;;  %s1042_s0 = inlined_call_operand.vmem [shape: f32[2,4,256], index: 0, kind: input, shape index: {}]   ;;  %s1043_s1 = inlined_call_operand.vmem [shape: f32[8,37], index: 1, kind: input, shape index: {}]   ;;  %s1044_s2 = inlined_call_operand.vmem [shape: f32[2,8,256], index: 2, kind: output, shape index: {}]  }
   0x1   :  { %v644_v0 = vld [vmem:[%s1042_s0] sm:$0xff]  ;;  %v649_v1 = vld [vmem:[%s1042_s0 + $0x8] sm:$0xff]  ;;  %s619_s0 = smov 17   ;;  %s620_s15 = smov 15   ;;  %420 = vmatprep.mubr.f32.mxu0 %v625_v6  ;;  %491 = vmatprep.mubr.f32.mxu1 %v625_v6  ;;  %v1057_v36 = vmov 0 }
   0x2   :  { %v653_v2 = vcombine.high %v644_v0, %v644_v0  ;;  %v657_v3 = vcombine.high %v649_v1, %v649_v1  ;;  %s621_s16 = smov 127   ;;  %s622_s17 = smov 112   ;;  %v667_v8 = vand.u32 127, %v20_v7 }
   0x3   :  { %s623_s18 = smov 113   ;;  %s624_s19 = smov 111  }
   0x4   :  { %v555_v4 = vpack.i.bf16 %v653_v2, %v644_v0  ;;  %v560_v5 = vpack.i.bf16 %v657_v3, %v649_v1  ;;  %v22_v9 = vadd.s32 128, %v667_v8  ;;  %v24_v11 = vadd.s32 384, %v667_v8 }
   0x5   :  { %v672_v12 = vadd.s32 256, %v667_v8  ;;  %v25_v16 = vand.u32 15, %v667_v8  ;;  %v29_v17 = vshra.s32 %v667_v8, 4  ;;  %vm144_vm0 = vcmp.lt.s32.totalorder %v667_v8, 1 }
   0x6   :  { %556 = vrot.lane.b32.xlu1 %v555_v4, %s617_s13  ;;  %546 = vrot.lane.b32.xlu0 %v555_v4, %s618_s14  ;;  %v30_v10 = vshra.s32 %v22_v9, 4  ;;  %v26_v13 = vand.u32 15, %v22_v9  ;;  %v32_v15 = vshra.s32 %v24_v11, 4  ;;  %vm90_vm1 = vcmp.lt.s32.totalorder %v667_v8, 16 }
   0x7   :  { %v31_v18 = vshra.s32 %v672_v12, 4  ;;  %v28_v19 = vand.u32 15, %v24_v11  ;;  %v27_v22 = vand.u32 15, %v672_v12  ;;  %vm61_vm4 = vcmp.lt.s32.totalorder %v667_v8, 17 }
   0x8   :  { %v674_v14 = vand.u32 15, %v30_v10  ;;  %vm683_vm3 = vcmp.ge.s32.totalorder %v26_v13, 1  ;;  %v688_v24 = vand.u32 15, %v32_v15  ;;  %vm690_vm5 = vcmp.lt.s32.totalorder %v25_v16, 15 }
   0x9   :  { %v1050_v23 = vsel %vm683_vm3, 4294967295, %v1049_v23  ;;  %v694_v30 = vand.u32 15, %v29_v17  ;;  %vm696_vm6 = vcmp.ge.s32.totalorder %v25_v16, 1  ;;  %v700_v32 = vand.u32 15, %v31_v18 }
   0xa   :  { %561 = vrot.lane.b32.xlu1 %v560_v5, %s617_s13  ;;  %551 = vrot.lane.b32.xlu0 %v560_v5, %s618_s14  ;;  %vm38_vm2 = vcmp.ge.s32.totalorder %v674_v14, 1  ;;  %v1054_v31 = vsel %vm696_vm6, 4294967295, %v1053_v31  ;;  %vm706_vm7 = vcmp.lt.s32.totalorder %v26_v13, 15  ;;  %vm710_vm9 = vcmp.ge.s32.totalorder %v28_v19, 1 }
   0xb   :  { %v1058_v36 = vsel %vm710_vm9, 4294967295, %v1057_v36  ;;  %vm1045_vm11 = vcmp.ge.s32.totalorder %v688_v24, 1  ;;  %vm720_vm12 = vcmp.lt.s32.totalorder %v28_v19, 15  ;;  %vm37_vm13 = vcmp.ge.s32.totalorder %v694_v30, 1  ;;  %vm742_vm10 = vmand %vm38_vm2, %vm683_vm3 }
   0xc   :  { %vm726_vm15 = vcmp.ge.s32.totalorder %v27_v22, 1  ;;  %vm755_vm14 = vmand %vm1045_vm11, %vm710_vm9  ;;  %vm773_vm8 = vcmp.lt.s32.totalorder %v27_v22, 15 }
   0xe   :  { %571 = vrot.lane.b32.xlu1 %v560_v5, %s619_s0  ;;  %566 = vrot.lane.b32.xlu0 %v555_v4, %s619_s0 }
  0x12   :  { %581 = vrot.lane.b32.xlu1 %v560_v5, %s620_s15  ;;  %576 = vrot.lane.b32.xlu0 %v555_v4, %s620_s15 }
  0x16   :  { %591 = vrot.lane.b32.xlu1 %v560_v5, %s621_s16  ;;  %586 = vrot.lane.b32.xlu0 %v555_v4, %s621_s16 }
  0x1a   :  { %601 = vrot.lane.b32.xlu1 %v560_v5, %s622_s17  ;;  %596 = vrot.lane.b32.xlu0 %v555_v4, %s622_s17 }
  0x1e   :  { %611 = vrot.lane.b32.xlu1 %v560_v5, %s623_s18  ;;  %606 = vrot.lane.b32.xlu0 %v555_v4, %s623_s18 }
  0x22   :  { %242 = vrot.lane.b32.xlu1 %v653_v2, %s624_s19  ;;  %240 = vrot.lane.b32.xlu0 %v644_v0, %s624_s19 }
  0x26   :  { %246 = vrot.lane.b32.xlu1 %v657_v3, %s624_s19  ;;  %244 = vrot.lane.b32.xlu0 %v649_v1, %s624_s19 }
  0x78   :  { %v557_v20 = vpop.permute.xlu1 %556  ;;  %v547_v21 = vpop.permute.xlu0 %546 }
  0x79   :  { %v559_v25 = vunpack.i.h.bf16 %v557_v20  ;;  %v558_v26 = vunpack.i.l.bf16 %v557_v20  ;;  %v549_v27 = vunpack.i.h.bf16 %v547_v21  ;;  %v548_v28 = vunpack.i.l.bf16 %v547_v21 }
  0x7b   :  { %v147_v33 = vsel %vm144_vm0, %v558_v26, %v559_v25  ;;  %v93_v34 = vsel %vm90_vm1, %v548_v28, %v549_v27 }
  0x7c   :  { %v562_v37 = vpop.permute.xlu1 %561  ;;  %v552_v38 = vpop.permute.xlu0 %551  ;;  %v104_v39 = vsel %vm38_vm2, %v93_v34, 0.0  ;;  %v158_v40 = vsel %vm683_vm3, %v147_v33, 0.0 }
  0x7d   :  { %v564_v42 = vunpack.i.h.bf16 %v562_v37  ;;  %v563_v43 = vunpack.i.l.bf16 %v562_v37  ;;  %v554_v44 = vunpack.i.h.bf16 %v552_v38  ;;  %v553_v45 = vunpack.i.l.bf16 %v552_v38 }
  0x7e   :  { %v274_v46 = vrot.slane %v104_v39, 4  ;;  %v286_v52 = vrot.slane %v158_v40, 4 }
  0x7f   :  { %v145_v48 = vsel %vm144_vm0, %v563_v43, %v564_v42  ;;  %v734_v49 = vsel %vm144_vm0, %v559_v25, %v563_v43  ;;  %v91_v50 = vsel %vm90_vm1, %v553_v45, %v554_v44  ;;  %v148_v53 = vsel %vm144_vm0, %v564_v42, %v558_v26  ;;  %vm767_vm0 = vmand %vm37_vm13, %vm696_vm6 }
  0x80   :  { %v94_v54 = vsel %vm90_vm1, %v554_v44, %v548_v28  ;;  %v572_v55 = vpop.permute.xlu1 %571  ;;  %v567_v56 = vpop.permute.xlu0 %566  ;;  %v106_v58 = vsel %vm1045_vm11, %v91_v50, 0.0  ;;  %v160_v59 = vsel %vm710_vm9, %v145_v48, 0.0  ;;  %v92_v5 = vsel %vm90_vm1, %v549_v27, %v553_v45  ;;  %vm781_vm11 = vmand %vm38_vm2, %vm706_vm7 }
  0x81   :  { %v574_v60 = vunpack.i.h.bf16 %v572_v55  ;;  %v573_v61 = vunpack.i.l.bf16 %v572_v55  ;;  %v569_v62 = vunpack.i.h.bf16 %v567_v56  ;;  %v568_v63 = vunpack.i.l.bf16 %v567_v56 }
  0x82   :  { %v276_v9 = vrot.slane %v106_v58, 4  ;;  %v288_v10 = vrot.slane %v160_v59, 4  ;;  %v103_v11 = vsel %vm37_vm13, %v94_v54, 0.0  ;;  %vm1073_vm1 = vcmp.ge.s32.totalorder %v688_v24, 1 }
  0x83   :  { %v64_v12 = vsel %vm61_vm4, %v568_v63, %v569_v62  ;;  %v62_v13 = vsel %vm61_vm4, %v573_v61, %v574_v60  ;;  %vm795_vm9 = vmand %vm1073_vm1, %vm720_vm12  ;;  %v65_v16 = vsel %vm61_vm4, %v574_v60, %v568_v63  ;;  %v157_v17 = vsel %vm696_vm6, %v148_v53, 0.0 }
  0x84   :  { %v582_v18 = vpop.permute.xlu1 %581  ;;  %v577_v19 = vpop.permute.xlu0 %576  ;;  %v79_v20 = vsel %vm742_vm10, %v64_v12, 0.0  ;;  %v81_v21 = vsel %vm755_vm14, %v62_v13, 0.0  ;;  %v78_v22 = vsel %vm767_vm0, %v65_v16, 0.0  ;;  %vm814_vm1 = vmand %vm37_vm13, %vm690_vm5  ;;  %v273_v26 = vrot.slane %v103_v11, 4 }
  0x85   :  { %v584_v27 = vunpack.i.h.bf16 %v582_v18  ;;  %v583_v28 = vunpack.i.l.bf16 %v582_v18  ;;  %v579_v33 = vunpack.i.h.bf16 %v577_v19  ;;  %v578_v34 = vunpack.i.l.bf16 %v577_v19 }
  0x86   :  { %vm1078_vm10 = vcmp.ge.s32.totalorder %v700_v32, 1  ;;  %vm1081_vm0 = vcmask 1043456   ;;  %v285_v40 = vrot.slane %v157_v17, 4  ;;  %v830_v42 = vsel %vm61_vm4, %v569_v62, %v573_v61 }
  0x87   :  { %vm822_vm14 = vmand %vm1078_vm10, %vm726_vm15  ;;  %v319_v38 = vsel %vm1081_vm0, %v79_v20, %v274_v46  ;;  %vm1083_vm13 = vcmp.lt.s32.totalorder %v667_v8, 15 }
  0x88   :  { %vm1082_vm2 = vmmov %vm1081_vm0  ;;  %v118_v43 = vsel %vm1083_vm13, %v578_v34, %v579_v33  ;;  %v592_v46 = vpop.permute.xlu1 %591  ;;  %v587_v50 = vpop.permute.xlu0 %586  ;;  %v80_v55 = vsel %vm822_vm14, %v830_v42, 0.0  ;;  %vm248_vm14 = vcmp.lt.s32.totalorder %v667_v8, 111 }
  0x89   :  { %v321_v39 = vsel %vm1082_vm2, %v81_v21, %v276_v9  ;;  %vm1084_vm6 = vmmov %vm1083_vm13  ;;  %v133_v51 = vsel %vm781_vm11, %v118_v43, 0.0  ;;  %v594_v56 = vunpack.i.h.bf16 %v592_v46  ;;  %v593_v57 = vunpack.i.l.bf16 %v592_v46 }
  0x8a   :  { %v116_v44 = vsel %vm1084_vm6, %v583_v28, %v584_v27  ;;  %vm1085_vm10 = vmmov %vm1084_vm6  ;;  %v589_v58 = vunpack.i.h.bf16 %v587_v50  ;;  %v588_v59 = vunpack.i.l.bf16 %v587_v50 }
  0x8b   :  { %v119_v45 = vsel %vm1085_vm10, %v584_v27, %v578_v34  ;;  %vm1086_vm3 = vmmov %vm1081_vm0  ;;  %vm41_vm0 = vcmp.lt.s32.totalorder %v694_v30, 15  ;;  %v135_v53 = vsel %vm795_vm9, %v116_v44, 0.0  ;;  %vm1090_vm10 = vcmp.lt.s32.totalorder %v667_v8, 127 }
  0x8c   :  { %v318_v48 = vsel %vm1086_vm3, %v78_v22, %v273_v26  ;;  %v132_v54 = vsel %vm814_vm1, %v119_v45, 0.0  ;;  %vm44_vm3 = vcmp.lt.s32.totalorder %v688_v24, 15  ;;  %vm1087_vm11 = vmmov %vm1082_vm2  ;;  %vm1089_vm1 = vcmp.ge.s32.totalorder %v700_v32, 1  ;;  %v602_v11 = vpop.permute.xlu1 %601  ;;  %v597_v12 = vpop.permute.xlu0 %596 }
  0x8d   :  { %v323_v60 = vsel %vm1087_vm11, %v133_v51, %v286_v52  ;;  %vm1088_vm9 = vmmov %vm1082_vm2  ;;  %v322_v62 = vsel %vm1082_vm2, %v132_v54, %v285_v40  ;;  %v105_v63 = vsel %vm1089_vm1, %v92_v5, 0.0  ;;  %v170_v4 = vsel %vm1090_vm10, %v593_v57, %v594_v56 }
  0x8e   :  { %v325_v61 = vsel %vm1088_vm9, %v135_v53, %v288_v10  ;;  %vm1091_vm4 = vmmov %vm1090_vm10  ;;  %v184_v10 = vsel %vm773_vm8, %v170_v4, 0.0  ;;  %v520_v15 = vpack.c.bf16 %v323_v60, %v319_v38  ;;  %v604_v17 = vunpack.i.h.bf16 %v602_v11 }
  0x8f   :  { %v171_v7 = vsel %vm1091_vm4, %v589_v58, %v593_v57  ;;  %vm1092_vm6 = vmmov %vm1091_vm4  ;;  %v873_v16 = vrot.slane %v184_v10, 4  ;;  %v603_v18 = vunpack.i.l.bf16 %v602_v11  ;;  %v599_v22 = vunpack.i.h.bf16 %v597_v12 }
  0x90   :  { %v172_v52 = vsel %vm1092_vm6, %v588_v59, %v589_v58  ;;  %vm1093_vm11 = vmmov %vm1091_vm4  ;;  %v183_v13 = vsel %vm706_vm7, %v171_v7, 0.0  ;;  %v598_v25 = vunpack.i.l.bf16 %v597_v12  ;;  %521 = vmatprep.subr.bf16.mxu0 %v520_v15  ;;  %vm1098_vm2 = vcmp.lt.s32.totalorder %v667_v8, 112  ;;  %v612_v43 = vpop.permute.xlu1 %611  ;;  %v607_v44 = vpop.permute.xlu0 %606 }
  0x91   :  { %v173_v9 = vsel %vm1093_vm11, %v594_v56, %v588_v59  ;;  %v182_v5 = vsel %vm690_vm5, %v172_v52, 0.0  ;;  %vm1094_vm4 = vmmov %vm1083_vm13  ;;  %v224_v27 = vsel %vm1098_vm2, %v603_v18, %v604_v17  ;;  %v298_v34 = vrot.slane %v183_v13, 4 }
  0x92   :  { %v117_v19 = vsel %vm1094_vm4, %v579_v33, %v583_v28  ;;  %vm1095_vm6 = vmmov %vm1089_vm1  ;;  %v297_v21 = vrot.slane %v182_v5, 4  ;;  %v185_v26 = vsel %vm720_vm12, %v173_v9, 0.0  ;;  %v528_v28 = vpack.c.bf16 %v325_v61, %v321_v39 }
  0x93   :  { %vm881_vm9 = vmand %vm1095_vm6, %vm773_vm8  ;;  %v522_v33 = vpack.c.bf16 %v322_v62, %v318_v48  ;;  %v300_v40 = vrot.slane %v185_v26, 4  ;;  %v159_v45 = vsel %vm726_vm15, %v734_v49, 0.0  ;;  %v275_v39 = vrot.slane %v105_v63, 4 }
  0x94   :  { %vm1099_vm1 = vmmov %vm1098_vm2  ;;  %v134_v42 = vsel %vm881_vm9, %v117_v19, 0.0  ;;  %529 = vmatprep.subr.bf16.mxu1 %v528_v28  ;;  %v614_v48 = vunpack.i.h.bf16 %v612_v43  ;;  %v613_v46 = vunpack.i.l.bf16 %v612_v43  ;;  %v287_v51 = vrot.slane %v159_v45, 4  ;;  %v243_v62 = vpop.permute.xlu1 %242  ;;  %v241_v63 = vpop.permute.xlu0 %240 }
  0x95   :  { %v226_v37 = vsel %vm1099_vm1, %v598_v25, %v599_v22  ;;  %vm1100_vm10 = vmmov %vm1099_vm1  ;;  %523 = vmatpush1.bf16.msra.mxu0 %v522_v33  ;;  %v609_v53 = vunpack.i.h.bf16 %v607_v44  ;;  %v608_v54 = vunpack.i.l.bf16 %v607_v44  ;;  %vm1103_vm4 = vnez %v1050_v23 }
  0x96   :  { %v227_v38 = vsel %vm1100_vm10, %v604_v17, %v598_v25  ;;  %vm902_vm11 = vmand %vm44_vm3, %vm720_vm12  ;;  %v236_v56 = vsel %vm41_vm0, %v226_v37, 0.0  ;;  %vm1104_vm6 = vcmp.lt.s32.totalorder %v674_v14, 15  ;;  %vm1108_vm12 = vcmask 1043456  }
  0x97   :  { %vm912_vm9 = vmand %vm1104_vm6, %vm1103_vm4  ;;  %v320_v57 = vsel %vm1108_vm12, %v80_v55, %v275_v39  ;;  %v239_v59 = vsel %vm44_vm3, %v227_v38, 0.0  ;;  %vm1110_vm10 = vnez %v1058_v36  ;;  %v309_v4 = vrot.slane %v236_v56, 4 }
  0x98   :  { %vm1107_vm2 = vmmov %vm1099_vm1  ;;  %vm1109_vm1 = vcmp.lt.s32.totalorder %v667_v8, 113  ;;  %v251_v52 = vsel %vm248_vm14, %v241_v63, %v243_v62  ;;  %v312_v10 = vrot.slane %v239_v59, 4  ;;  %v245_v19 = vpop.permute.xlu0 %244 }
  0x99   :  { %v225_v41 = vsel %vm1107_vm2, %v599_v22, %v603_v18  ;;  %v195_v58 = vsel %vm1109_vm1, %v613_v46, %v614_v48  ;;  %vm927_vm13 = vmand %vm44_vm3, %vm1110_vm10  ;;  %vm343_vm3 = vcmask 1044480   ;;  %v247_v18 = vpop.permute.xlu1 %246 }
  0x9a   :  { %vm1113_vm4 = vmmov %vm1108_vm12  ;;  %vm1116_vm12 = vnez %v1054_v31  ;;  %v249_v25 = vsel %vm248_vm14, %v245_v19, %v247_v18 }
  0x9b   :  { %v324_v60 = vsel %vm1113_vm4, %v134_v42, %v287_v51  ;;  %vm1114_vm6 = vmmov %vm1109_vm1  ;;  %vm1120_vm4 = vcmp.lt.s32.totalorder %v700_v32, 15 }
  0x9c   :  { %v196_v61 = vsel %vm1114_vm6, %v609_v53, %v613_v46  ;;  %vm1115_vm2 = vmmov %vm1109_vm1  ;;  %v530_v36 = vpack.c.bf16 %v324_v60, %v320_v57  ;;  %v238_v9 = vsel %vm1120_vm4, %v224_v27, 0.0 }
  0x9d   :  { %v198_v55 = vsel %vm1115_vm2, %v614_v48, %v608_v54  ;;  %vm940_vm1 = vmand %vm41_vm0, %vm1116_vm12  ;;  %vm1124_vm12 = vcmp.lt.s32.totalorder %v674_v14, 15  ;;  %v311_v11 = vrot.slane %v238_v9, 4  ;;  %v212_v47 = vsel %vm912_vm9, %v196_v61, 0.0 }
  0x9e   :  { %vm1119_vm10 = vmmov %vm1115_vm2  ;;  %531 = vmatpush1.bf16.msra.mxu1 %v530_v36  ;;  %v214_v14 = vsel %vm927_vm13, %v198_v55, 0.0 }
  0x9f   :  { %v197_v7 = vsel %vm1119_vm10, %v608_v54, %v609_v53  ;;  %vm1121_vm6 = vmmov %vm1120_vm4 }
  0xa0   :  { %vm954_vm2 = vmand %vm1121_vm6, %vm726_vm15  ;;  %v211_v32 = vsel %vm940_vm1, %v197_v7, 0.0 }
  0xa1   :  { %vm962_vm10 = vmand %vm1124_vm12, %vm706_vm7  ;;  %vm1131_vm7 = vcmask 1043456   ;;  %v213_v22 = vsel %vm954_vm2, %v195_v58, 0.0 }
  0xa2   :  { %vm1127_vm4 = vmmov %vm1124_vm12  ;;  %v327_v15 = vsel %vm1131_vm7, %v653_v2, %v298_v34  ;;  %v252_v2 = vsel %vm248_vm14, %v247_v18, %v241_v63 }
  0xa3   :  { %v237_v12 = vsel %vm1127_vm4, %v225_v41, 0.0  ;;  %vm1128_vm15 = vmmov %vm1121_vm6  ;;  %v268_v27 = vsel %vm902_vm11, %v252_v2, 0.0 }
  0xa4   :  { %vm974_vm6 = vmand %vm1128_vm15, %vm773_vm8  ;;  %v310_v13 = vrot.slane %v237_v12, 4 }
  0xa5   :  { %vm1132_vm12 = vmmov %vm1131_vm7 }
  0xa6   :  { %v329_v17 = vsel %vm1132_vm12, %v657_v3, %v300_v40  ;;  %vm1133_vm9 = vmmov %vm1131_vm7  ;;  %v250_v3 = vsel %vm248_vm14, %v243_v62, %v245_v19 }
  0xa7   :  { %v333_v6 = vsel %vm1133_vm9, %v214_v14, %v312_v10  ;;  %vm1134_vm8 = vmmov %vm1131_vm7 }
  0xa8   :  { %v326_v20 = vsel %vm1134_vm8, %v644_v0, %v297_v21  ;;  %vm1135_vm13 = vmmov %vm1131_vm7  ;;  %v266_v0 = vsel %vm962_vm10, %v250_v3, 0.0  ;;  %v267_v21 = vsel %vm974_vm6, %v249_v25, 0.0  ;;  %v532_v8 = vpack.c.bf16 %v333_v6, %v329_v17 }
  0xa9   :  { %v331_v26 = vsel %vm1135_vm13, %v212_v47, %v310_v13  ;;  %vm1008_vm1 = vmand %vm41_vm0, %vm690_vm5  ;;  %vm339_vm0 = vcmask 302080  }
  0xaa   :  { %v524_v34 = vpack.c.bf16 %v331_v26, %v327_v15  ;;  %vm1138_vm14 = vmmov %vm1131_vm7  ;;  %533 = vmatprep.subr.bf16.mxu1 %v532_v8  ;;  %v265_v43 = vsel %vm1008_vm1, %v251_v52, 0.0 }
  0xab   :  { %v330_v33 = vsel %vm1138_vm14, %v211_v32, %v309_v4  ;;  %vm1139_vm11 = vmmov %vm1131_vm7 }
  0xac   :  { %v328_v37 = vsel %vm1139_vm11, %v649_v1, %v873_v16  ;;  %vm1140_vm2 = vmmov %vm1131_vm7  ;;  %525 = vmatprep.subr.bf16.mxu0 %v524_v34  ;;  %v526_v40 = vpack.c.bf16 %v330_v33, %v326_v20  ;;  %v338_v16 = vld [vmem:[%s1043_s1] sm:$0xff] }
  0xad   :  { %v332_v38 = vsel %vm1140_vm2, %v213_v22, %v311_v11  ;;  %vm1141_vm10 = vmmov %vm1140_vm2 }
  0xae   :  { %v534_v42 = vpack.c.bf16 %v332_v38, %v328_v37  ;;  %v335_v29 = vsel %vm1141_vm10, %v266_v0, 1.0  ;;  %vm1142_vm4 = vmmov %vm1140_vm2  ;;  %527 = vmatpush1.bf16.msra.mxu0 %v526_v40 }
  0xaf   :  { %v337_v30 = vsel %vm1142_vm4, %v268_v27, 1.0  ;;  %512 = vmatprep.subr.msk.mxu0 %vm343_vm3, %v335_v29  ;;  %vm1143_vm5 = vmmov %vm1140_vm2 }
  0xb0   :  { %535 = vmatpush1.bf16.msra.mxu1 %v534_v42  ;;  %v336_v1 = vsel %vm1143_vm5, %v267_v21, 1.0  ;;  %vm1144_vm15 = vmmov %vm1140_vm2 }
  0xb1   :  { %515 = vmatprep.subr.msk.mxu1 %vm343_vm3, %v337_v30  ;;  %v334_v44 = vsel %vm1144_vm15, %v265_v43, 1.0 }
  0xb2   :  { %513 = vmatpush1.msk.msra.mxu0 %vm343_vm3, %v334_v44 }
  0xb3   :  { %514 = vmatmul.mubr.msk.f32.vlgmr.msra.gmra.mrb[0].mxu0 %vm339_vm0, %v338_v16 }
  0xb4   :  { %516 = vmatpush1.msk.msra.mxu1 %vm343_vm3, %v336_v1 }
  0xb5   :  { %517 = vmatmul.mubr.msk.f32.vlgmr.msra.gmra.mrb[0].mxu1 %vm339_vm0, %v338_v16 }
 0x186   :  { %v422_v45 = vpop.f32.mrb[0].mxu0 }
 0x187   :  { %v498_v48 = vmax.f32 %v422_v45, 0.0  ;;  %v424_v50 = vpop.f32.mrb[1].mxu0 }
 0x188   :  { %v493_v39 = vpop.f32.mrb[0].mxu1  ;;  %v499_v53 = vmax.f32 %v424_v50, 0.0 }
 0x189   :  { %v500_v46 = vmax.f32 %v493_v39, 0.0  ;;  %v495_v51 = vpop.f32.mrb[1].mxu1  ;;  %502 = vst [vmem:[%s1044_s2] sm:$0xff] %v498_v48 }
 0x18a   :  { %v501_v54 = vmax.f32 %v495_v51, 0.0  ;;  %503 = vst [vmem:[%s1044_s2 + $0x8] sm:$0xff] %v499_v53 }
 0x18b   :  { %518 = vst [vmem:[%s1044_s2 + $0x10] sm:$0xff] %v500_v46 }
 0x18c   :  { %519 = vst [vmem:[%s1044_s2 + $0x18] sm:$0xff] %v501_v54 }

</bundles_post_ra>
